<compile_context>
chip_gen: v7x
topology: tpu7x:2x2x1
jax: 0.10.0
libtpu: 0.0.40
codegen_flags: <defaults>
</compile_context>

<pallas_src>
import functools

import jax
import jax.numpy as jnp
from jax import lax
from jax.experimental import pallas as pl
from jax.experimental.pallas import tpu as pltpu

KPAD = 128                            # lane-dense scorer output width


def _vmem_limit_bytes():
    # ~3/4 of physical VMEM: ~96 MiB on v5e/v6e (128 MiB), ~48 MiB on v7x (64 MiB).
    try:
        cap = int(pltpu.get_tpu_info().vmem_capacity_bytes)
    except Exception:
        cap = 64 * 1024 * 1024
    return max(32 * 1024 * 1024, min(96 * 1024 * 1024, (cap * 3) // 4))


_VMEM_LIMIT = _vmem_limit_bytes()


def _cparams(grid_rank):
    return pltpu.CompilerParams(
        dimension_semantics=("parallel",) * grid_rank,
        vmem_limit_bytes=_VMEM_LIMIT)


def _pick_row_tile(m, target=1024):
    """Largest row tile <= target that divides m and is a multiple of 8 (else full m)."""
    if m <= target:
        return m
    for t in range(min(target, m), 7, -1):
        if m % t == 0 and t % 8 == 0:
            return t
    return m


def _bdot(a, b):
    """MXU matmul: bf16 operands (no-op cast if already bf16), f32 accumulation."""
    return jnp.dot(a.astype(jnp.bfloat16), b.astype(jnp.bfloat16),
                   preferred_element_type=jnp.float32)


def _ln(x, g, b, eps=1e-5):
    mu = jnp.mean(x, axis=-1, keepdims=True)
    var = jnp.mean(jnp.square(x - mu), axis=-1, keepdims=True)
    return (x - mu) * lax.rsqrt(var + eps) * g + b


# --------------------------------------------------------------------------
# Kernel 1: eln + indicator fold + input projection
# --------------------------------------------------------------------------
def _embed_proj_kernel(emb_ref, mask_ref, flag_ref, indproj_ref, g_ref, bln_ref,
                       we_ref, bias_ref, o_ref, *, eps, apply_ln):
    x = emb_ref[...].astype(jnp.float32)                    # (tm, E)
    if apply_ln:
        x = _ln(x * mask_ref[...], g_ref[...], bln_ref[...], eps)
    flag = flag_ref[...]                                    # (tm, 1) in {0, 1}
    # indicator_emb @ W_i was pre-projected to (2, H) on the host -> pure VPU lerp.
    ind = flag * indproj_ref[1:2, :] + (1.0 - flag) * indproj_ref[0:1, :]
    out = _bdot(x, we_ref[...]) + ind + bias_ref[...]
    o_ref[...] = out.astype(o_ref.dtype)


def embed_project(embeds, sent_mask, predicate_flags, p, *, apply_ln=True, eps=1e-5):
    B, T, E = embeds.shape
    M = B * T
    H = p["trm_in_we"].shape[1]
    # cat([embeds, indicator]) @ W == embeds @ W_e + indicator @ W_i; the second
    # term only has 2 distinct rows, so project it outside the kernel (tiny).
    ind_proj = jnp.dot(p["indicator_emb"], p["trm_in_wi"],
                       preferred_element_type=jnp.float32)              # (2, H)
    tm = _pick_row_tile(M)
    row = lambda i: (i, 0)
    cst = lambda i: (0, 0)
    # TODO(synk): constant blocks could be single-buffered via pipeline_mode=pl.Buffered(1)
    # to halve their VMEM once that path is universally supported.
    out = pl.pallas_call(
        functools.partial(_embed_proj_kernel, eps=eps, apply_ln=apply_ln),
        out_shape=jax.ShapeDtypeStruct((M, H), jnp.bfloat16),
        grid=(M // tm,),
        in_specs=[pl.BlockSpec((tm, E), row),
                  pl.BlockSpec((tm, 1), row),
                  pl.BlockSpec((tm, 1), row),
                  pl.BlockSpec((2, H), cst),
                  pl.BlockSpec((1, E), cst),
                  pl.BlockSpec((1, E), cst),
                  pl.BlockSpec((E, H), cst),
                  pl.BlockSpec((1, H), cst)],
        out_specs=pl.BlockSpec((tm, H), row),
        compiler_params=_cparams(1),
    )(embeds.reshape(M, E).astype(jnp.bfloat16),
      sent_mask.reshape(M, 1).astype(jnp.float32),
      predicate_flags.reshape(M, 1).astype(jnp.float32),
      ind_proj, p["eln_g"], p["eln_b"], p["trm_in_we"], p["trm_in_b"])
    return out.reshape(B, T, H)


# --------------------------------------------------------------------------
# Kernel 2: transformer encoder with (batch, layer) grid
# --------------------------------------------------------------------------
def _encoder_layer_kernel(x_ref, wq_ref, wk_ref, wv_ref, wo_ref,
                          ln1g_ref, ln1b_ref, w1_ref, b1_ref, w2_ref, b2_ref,
                          ln2g_ref, ln2b_ref, o_ref, xs_ref):
    l = pl.program_id(1)
    nl = pl.num_programs(1)
    Bb, T, H = xs_ref.shape
    scale = 1.0 / float(H) ** 0.5

    @pl.when(l == 0)
    def _():
        xs_ref[...] = x_ref[...].astype(jnp.float32)

    x = xs_ref[...]                                         # (Bb, T, H) f32, resident
    x2 = x.reshape(Bb * T, H)                               # fill MXU M with Bb*T rows
    q = _bdot(x2, wq_ref[0]).reshape(Bb, T, H)
    k = _bdot(x2, wk_ref[0]).reshape(Bb, T, H)
    v = _bdot(x2, wv_ref[0]).reshape(Bb, T, H)
    # TODO(synk): reference TransformerEncoder is undefined; single-head attention,
    # no key-padding mask applied in the softmax.
    s = jnp.einsum("bqd,bkd->bqk", q.astype(jnp.bfloat16), k.astype(jnp.bfloat16),
                   preferred_element_type=jnp.float32) * scale
    p_attn = jax.nn.softmax(s, axis=-1)                     # f32 softmax
    ctx = jnp.einsum("bqk,bkd->bqd", p_attn.astype(jnp.bfloat16),
                     v.astype(jnp.bfloat16), preferred_element_type=jnp.float32)
    attn = _bdot(ctx.reshape(Bb * T, H), wo_ref[0]).reshape(Bb, T, H)
    x = _ln(x + attn, ln1g_ref[0], ln1b_ref[0])
    h = jnp.maximum(_bdot(x.reshape(Bb * T, H), w1_ref[0]) + b1_ref[0], 0.0)
    h = (_bdot(h, w2_ref[0]) + b2_ref[0]).reshape(Bb, T, H)
    x = _ln(x + h, ln2g_ref[0], ln2b_ref[0])
    xs_ref[...] = x

    @pl.when(l == nl - 1)
    def _():
        o_ref[...] = x.astype(o_ref.dtype)


def transformer_encoder(x, tp):
    B, T, H = x.shape
    L = tp["wq"].shape[0]
    # Pack several sequences per grid step (>=128 MXU rows when possible).
    Bb = max(1, min(B, max(1, 256 // max(T, 1))))
    while B % Bb:
        Bb -= 1
    xspec = pl.BlockSpec((Bb, T, H), lambda b, l: (b, 0, 0))

    def lw(shape):                                          # per-layer weight block
        return pl.BlockSpec((1,) + shape[1:], lambda b, l: (l,) + (0,) * (len(shape) - 1))

    return pl.pallas_call(
        _encoder_layer_kernel,
        out_shape=jax.ShapeDtypeStruct((B, T, H), jnp.bfloat16),
        grid=(B // Bb, L),
        in_specs=[xspec,
                  lw((L, H, H)), lw((L, H, H)), lw((L, H, H)), lw((L, H, H)),
                  lw((L, 1, H)), lw((L, 1, H)),
                  lw((L, H, 2 * H)), lw((L, 1, 2 * H)),
                  lw((L, 2 * H, H)), lw((L, 1, H)),
                  lw((L, 1, H)), lw((L, 1, H))],
        out_specs=xspec,
        scratch_shapes=[pltpu.VMEM((Bb, T, H), jnp.float32)],
        compiler_params=pltpu.CompilerParams(
            dimension_semantics=("parallel", "arbitrary"),
            vmem_limit_bytes=_VMEM_LIMIT),
    )(x, tp["wq"], tp["wk"], tp["wv"], tp["wo"],
      tp["ln1_g"], tp["ln1_b"], tp["ffn_w1"], tp["ffn_b1"],
      tp["ffn_w2"], tp["ffn_b2"], tp["ln2_g"], tp["ln2_b"])


# --------------------------------------------------------------------------
# Kernel 3: constituency GCN chain (3 layers fused)
# --------------------------------------------------------------------------
_GCN_NO_LOOP = (True, False, True)    # layer order: w_c, c_c, c_w (as in reference forward)


def _const_gcn_chain_kernel(x_ref, ai0_ref, ao0_ref, ai1_ref, ao1_ref, ai2_ref, ao2_ref,
                            mask_ref, win_ref, bin_ref, wout_ref, bout_ref,
                            wloop_ref, bloop_ref, o_ref, *, no_loop_flags):
    x = x_ref[0].astype(jnp.float32)                        # (N, H)
    mask = mask_ref[0]                                      # (N, 1)
    adj = ((ai0_ref, ao0_ref), (ai1_ref, ao1_ref), (ai2_ref, ao2_ref))
    for l, no_loop in enumerate(no_loop_flags):
        a_in = adj[l][0][0]                                 # (N, N) bf16
        a_out = adj[l][1][0]
        h = _bdot(a_in, _bdot(x, win_ref[l]) + bin_ref[l])
        h = h + _bdot(a_out, _bdot(x, wout_ref[l]) + bout_ref[l])
        if not no_loop:
            h = h + _bdot(x, wloop_ref[l]) + bloop_ref[l]
        h = jnp.maximum(h, 0.0) * mask                      # relu non-linearity + node mask
        x = h + x                                           # residual=True
    o_ref[0] = x.astype(o_ref.dtype)


def const_gcn_chain(x, adj_pairs, mask_all, gp):
    # TODO(synk): batching multiple sequences per step (as done in the encoder) would
    # further fill the MXU for the projection matmuls; kept per-batch for simplicity.
    B, N, H = x.shape
    nl = len(adj_pairs)
    xspec = pl.BlockSpec((1, N, H), lambda b: (b, 0, 0))
    aspec = pl.BlockSpec((1, N, N), lambda b: (b, 0, 0))
    mspec = pl.BlockSpec((1, N, 1), lambda b: (b, 0, 0))
    wspec = pl.BlockSpec((nl, H, H), lambda b: (0, 0, 0))
    bspec = pl.BlockSpec((nl, 1, H), lambda b: (0, 0, 0))
    adj_flat = [a for pair in adj_pairs for a in pair]      # 6 x (B, N, N) bf16
    return pl.pallas_call(
        functools.partial(_const_gcn_chain_kernel, no_loop_flags=_GCN_NO_LOOP),
        out_shape=jax.ShapeDtypeStruct((B, N, H), jnp.bfloat16),
        grid=(B,),
        in_specs=[xspec] + [aspec] * 6
                 + [mspec, wspec, bspec, wspec, bspec, wspec, bspec],
        out_specs=xspec,
        compiler_params=_cparams(1),
    )(x, *adj_flat, mask_all[:, :, None].astype(jnp.float32),
      gp["w_in"], gp["b_in"], gp["w_out"], gp["b_out"], gp["w_loop"], gp["b_loop"])


# --------------------------------------------------------------------------
# Kernel 4: dependency GCN + gated fusion + hidden2argument
# --------------------------------------------------------------------------
def _dep_fuse_kernel(x_ref, adj_ref, lab_ref, const_ref,
                     w1_ref, b1_ref, w2_ref, b2_ref, h2aw_ref, h2ab_ref,
                     hes_ref, arg_ref):
    x = x_ref[0]                                            # (T, 2H) bf16
    h = _bdot(x, w1_ref[...]) + b1_ref[...] + lab_ref[0].astype(jnp.float32)
    h = _bdot(adj_ref[0], h)
    h = jnp.maximum(h, 0.0)
    dep = _bdot(h, w2_ref[...]) + b2_ref[...]               # (T, H) f32
    const = const_ref[0].astype(jnp.float32)                # (T, H)
    g = jax.nn.sigmoid(dep)
    # TODO(synk): reference's `all_one` is literally torch zeros((b, t)); keep
    # hesyfu = g*dep + (0 - g)*const rather than the conventional (1 - g)*const.
    hes = g * dep + (0.0 - g) * const
    hes_ref[0] = hes.astype(hes_ref.dtype)
    arg_ref[0] = jnp.maximum(_bdot(hes, h2aw_ref[...]) + h2ab_ref[...],
                             0.0).astype(arg_ref.dtype)


def dep_fuse(dep_in, adj, lab, const_out, p):
    B, T, D = dep_in.shape
    H = const_out.shape[-1]
    xspec = pl.BlockSpec((1, T, D), lambda b: (b, 0, 0))
    aspec = pl.BlockSpec((1, T, T), lambda b: (b, 0, 0))
    cspec = pl.BlockSpec((1, T, H), lambda b: (b, 0, 0))

    def wc(shape):
        return pl.BlockSpec(shape, lambda b: (0,) * len(shape))

    return pl.pallas_call(
        _dep_fuse_kernel,
        out_shape=(jax.ShapeDtypeStruct((B, T, H), jnp.bfloat16),
                   jax.ShapeDtypeStruct((B, T, H), jnp.bfloat16)),
        grid=(B,),
        in_specs=[xspec, aspec, xspec, cspec,
                  wc((D, D)), wc((1, D)), wc((D, H)), wc((1, H)),
                  wc((H, H)), wc((1, H))],
        out_specs=(cspec, cspec),
        compiler_params=_cparams(1),
    )(dep_in, adj, lab, const_out,
      p["dep_w1"], p["dep_b1"], p["dep_w2"], p["dep_b2"],
      p["h2a_w"], p["h2a_b"])


# --------------------------------------------------------------------------
# Kernel 5: hidden2predicate + per-tag bilinear scorer (gather done in wrapper)
# --------------------------------------------------------------------------
def _scorer_kernel(predrow_ref, arg_ref, h2pw_ref, h2pb_ref, u_ref,
                   wp_ref, wa_ref, bpad_ref, o_ref, *, n_tags):
    # hidden2predicate + relu on the pre-gathered predicate rows
    pred = jnp.maximum(_bdot(predrow_ref[...], h2pw_ref[...]) + h2pb_ref[...], 0.0)
    arg = arg_ref[...].astype(jnp.float32)                   # (tm, H): relu(h2a) from dep_fuse
    # Linear part of the bilinear scorer; lane-dense (tm, KPAD) accumulator.
    out = _bdot(pred, wp_ref[...]) + _bdot(arg, wa_ref[...]) + bpad_ref[...]
    lane = lax.broadcasted_iota(jnp.int32, (1, KPAD), 1)
    pred_b = pred.astype(jnp.bfloat16)
    # Bilinear per tag: (tm,H)@(H,H) on the MXU, elementwise * arg, reduce over H.
    for k in range(n_tags):
        t_k = jnp.dot(pred_b, u_ref[k], preferred_element_type=jnp.float32)  # (tm, H)
        col = jnp.sum(t_k * arg, axis=-1, keepdims=True)                     # (tm, 1)
        out = out + col * (lane == k).astype(jnp.float32)                    # scatter to lane k
    o_ref[...] = out


def bilinear_score(hesyfu2d, arg2d, pred_idx, p, *, n_tags):
    M, H = hesyfu2d.shape
    K = n_tags
    assert K <= KPAD
    # Predicate row gather (index_select in the reference) done with XLA's gather
    # in the wrapper; the kernel then sees plain row-tiled inputs.
    pred_rows = jnp.take(hesyfu2d, pred_idx.reshape(M).astype(jnp.int32), axis=0)
    wp = jnp.zeros((H, KPAD), jnp.float32).at[:, :K].set(p["bil_w"][:H]).astype(jnp.bfloat16)
    wa = jnp.zeros((H, KPAD), jnp.float32).at[:, :K].set(p["bil_w"][H:]).astype(jnp.bfloat16)
    bpad = jnp.zeros((1, KPAD), jnp.float32).at[:, :K].set(p["bil_b"])

    tm = _pick_row_tile(M)
    row = lambda i: (i, 0)
    cst2 = lambda i: (0, 0)
    cst3 = lambda i: (0, 0, 0)
    scores_pad = pl.pallas_call(
        functools.partial(_scorer_kernel, n_tags=K),
        out_shape=jax.ShapeDtypeStruct((M, KPAD), jnp.float32),
        grid=(M // tm,),
        in_specs=[pl.BlockSpec((tm, H), row),
                  pl.BlockSpec((tm, H), row),
                  pl.BlockSpec((H, H), cst2),
                  pl.BlockSpec((1, H), cst2),
                  pl.BlockSpec((K, H, H), cst3),
                  pl.BlockSpec((H, KPAD), cst2),
                  pl.BlockSpec((H, KPAD), cst2),
                  pl.BlockSpec((1, KPAD), cst2)],
        out_specs=pl.BlockSpec((tm, KPAD), row),
        compiler_params=_cparams(1),
    )(pred_rows, arg2d, p["h2p_w"], p["h2p_b"], p["bil_u"], wp, wa, bpad)
    return scores_pad[:, :K]                                 # slice lane-dense output outside


# --------------------------------------------------------------------------
# Parameter init (deterministic, synthetic); matmul weights stored in bf16
# --------------------------------------------------------------------------
def init_params(key, *, hidden_dim, tagset_size, num_layers, dep_tag_vocab_size,
                emb_dim, fixed_dim):
    H, L = hidden_dim, num_layers
    keys = iter(jax.random.split(key, 64))
    bf = jnp.bfloat16

    def nrm(shape, scale=0.1, dtype=jnp.float32):
        return (scale * jax.random.normal(next(keys), shape)).astype(dtype)

    p = {
        "indicator_emb": nrm((2, emb_dim)),
        "eln_g": jnp.ones((1, fixed_dim), jnp.float32),
        "eln_b": jnp.zeros((1, fixed_dim), jnp.float32),
        # input projection split so cat(embeds, indicator) folds into one matmul
        # plus a precomputed 2-row indicator projection.
        "trm_in_we": nrm((fixed_dim, H), dtype=bf),
        "trm_in_wi": nrm((emb_dim, H)),
        "trm_in_b": jnp.zeros((1, H), jnp.float32),
        "h2p_w": nrm((H, H), dtype=bf), "h2p_b": jnp.zeros((1, H), jnp.float32),
        "h2a_w": nrm((H, H), dtype=bf), "h2a_b": jnp.zeros((1, H), jnp.float32),
        "bil_u": nrm((tagset_size, H, H), dtype=bf),
        "bil_w": nrm((2 * H, tagset_size)),
        "bil_b": jnp.zeros((1, tagset_size), jnp.float32),
        "dep_lab_emb": nrm((dep_tag_vocab_size, 2 * H), dtype=bf),
        "dep_w1": nrm((2 * H, 2 * H), dtype=bf), "dep_b1": jnp.zeros((1, 2 * H), jnp.float32),
        "dep_w2": nrm((2 * H, H), dtype=bf), "dep_b2": jnp.zeros((1, H), jnp.float32),
    }
    p["trm"] = dict(
        wq=nrm((L, H, H), dtype=bf), wk=nrm((L, H, H), dtype=bf),
        wv=nrm((L, H, H), dtype=bf), wo=nrm((L, H, H), dtype=bf),
        ln1_g=jnp.ones((L, 1, H), jnp.float32), ln1_b=jnp.zeros((L, 1, H), jnp.float32),
        ffn_w1=nrm((L, H, 2 * H), dtype=bf), ffn_b1=jnp.zeros((L, 1, 2 * H), jnp.float32),
        ffn_w2=nrm((L, 2 * H, H), dtype=bf), ffn_b2=jnp.zeros((L, 1, H), jnp.float32),
        ln2_g=jnp.ones((L, 1, H), jnp.float32), ln2_b=jnp.zeros((L, 1, H), jnp.float32),
    )
    # 3 ConstGCN layers stacked along a leading axis (order: w_c, c_c, c_w)
    p["gcn"] = dict(
        w_in=nrm((3, H, H), dtype=bf), b_in=jnp.zeros((3, 1, H), jnp.float32),
        w_out=nrm((3, H, H), dtype=bf), b_out=jnp.zeros((3, 1, H), jnp.float32),
        w_loop=nrm((3, H, H), dtype=bf), b_loop=jnp.zeros((3, 1, H), jnp.float32),
    )
    return p


# --------------------------------------------------------------------------
# SRLer forward
# --------------------------------------------------------------------------
def srler_forward(p, sentence, predicate_flags, sent_mask, lengths, fixed_embs,
                  dependency_arcs, dependency_labels, constituent_labels,
                  const_GCN_w_c, const_GCN_c_w, const_GCN_c_c, mask_const_batch,
                  predicate_index, bert_embs, *, hidden_dim, tagset_size,
                  num_layers, use_bert=True, eln=True):
    del sentence, lengths, num_layers                        # unused in forward
    H = hidden_dim
    embeds = bert_embs if use_bert else fixed_embs           # (B, T, 768|100)
    B, T, _ = embeds.shape
    bf = jnp.bfloat16

    # ---- eln + indicator embedding fold + TrmEncoder input projection ----
    # (embedding_dropout / dropout: eval-mode identities)
    x = embed_project(embeds, sent_mask, predicate_flags, p, apply_ln=eln)    # (B,T,H) bf16

    # ---- TransformerEncoder (one layer resident at a time, (batch, layer) grid) ----
    base_out = transformer_encoder(x, p["trm"])                               # (B,T,H) bf16

    # ---- constituency GCN chain (3 ConstGCN layers fused) ----
    const_gcn_in = jnp.concatenate([base_out, constituent_labels.astype(bf)], axis=1)
    mask_all = jnp.concatenate([sent_mask, mask_const_batch], axis=1)         # (B,N)
    # TODO(synk): the reference passes sparse arc-index 7-tuples; dense (A_in, A_out)
    # adjacency matrices are used directly (label gates / edge dropout omitted).
    adj_pairs = [(const_GCN_w_c[0].astype(bf), const_GCN_w_c[1].astype(bf)),
                 (const_GCN_c_c[0].astype(bf), const_GCN_c_c[1].astype(bf)),
                 (const_GCN_c_w[0].astype(bf), const_GCN_c_w[1].astype(bf))]
    g = const_gcn_chain(const_gcn_in, adj_pairs, mask_all, p["gcn"])
    const_gcn_out = g[:, :T, :]                                               # (B,T,H) bf16

    # ---- dependency GCN + gated fusion + hidden2argument (fused) ----
    # TODO(synk): reference's dim=1 concat chain is shape-ambiguous for the undefined
    # submodules; feature-axis concat is used for the DepGCN input.
    dep_gcn_in = jnp.concatenate([base_out, const_gcn_out], axis=-1)          # (B,T,2H)
    lab_bias = jnp.take(p["dep_lab_emb"], dependency_labels.astype(jnp.int32), axis=0)
    hesyfu, arg_repr = dep_fuse(dep_gcn_in, dependency_arcs.astype(bf),
                                lab_bias.astype(bf), const_gcn_out, p)        # (B,T,H) x2

    # ---- predicate gather + hidden2predicate + bilinear scorer (fused) ----
    scores = bilinear_score(hesyfu.reshape(B * T, H), arg_repr.reshape(B * T, H),
                            predicate_index, p, n_tags=tagset_size)
    return scores.reshape(B, T, tagset_size)


# --------------------------------------------------------------------------
if __name__ == "__main__":
    B, T, TC = 2, 8, 4
    H, K = 128, 8                       # H multiple of 128 -> lane-dense stores/matmuls
    EMB, FIXED = 16, 768
    NUM_LAYERS = 2
    DEP_VOCAB = 10
    N = T + TC

    key = jax.random.PRNGKey(0)
    kp, kd = jax.random.split(key)
    params = init_params(kp, hidden_dim=H, tagset_size=K, num_layers=NUM_LAYERS,
                         dep_tag_vocab_size=DEP_VOCAB, emb_dim=EMB, fixed_dim=FIXED)

    ks = iter(jax.random.split(kd, 32))
    sentence = jax.random.randint(next(ks), (B, T), 0, 100)               # unused in forward
    predicate_flags = jax.random.bernoulli(next(ks), 0.2, (B, T)).astype(jnp.float32)
    sent_mask = jnp.ones((B, T), jnp.float32)
    lengths = jnp.full((B,), T, jnp.int32)                                # unused in forward
    fixed_embs = jnp.zeros((B, T, 100), jnp.float32)                      # unused (use_bert)
    dependency_arcs = jax.random.bernoulli(next(ks), 0.3, (B, T, T)).astype(jnp.float32)
    dependency_labels = jax.random.randint(next(ks), (B, T), 0, DEP_VOCAB)
    constituent_labels = 0.1 * jax.random.normal(next(ks), (B, TC, H), jnp.float32)

    def adj_pair(k):
        ka, kb = jax.random.split(k)
        return (jax.random.bernoulli(ka, 0.3, (B, N, N)).astype(jnp.float32),
                jax.random.bernoulli(kb, 0.3, (B, N, N)).astype(jnp.float32))

    const_GCN_w_c = adj_pair(next(ks))
    const_GCN_c_w = adj_pair(next(ks))
    const_GCN_c_c = adj_pair(next(ks))
    mask_const_batch = jnp.ones((B, TC), jnp.float32)
    predicate_index = jax.random.randint(next(ks), (B, T), 0, B * T)
    bert_embs = jax.random.normal(next(ks), (B, T, FIXED), jnp.float32)

    out = srler_forward(params, sentence, predicate_flags, sent_mask, lengths, fixed_embs,
                        dependency_arcs, dependency_labels, constituent_labels,
                        const_GCN_w_c, const_GCN_c_w, const_GCN_c_c, mask_const_batch,
                        predicate_index, bert_embs,
                        hidden_dim=H, tagset_size=K, num_layers=NUM_LAYERS)
    out = jax.block_until_ready(out)
    assert out.shape == (B, T, K) and out.dtype == jnp.float32
    print("KERNEL_OK")
</pallas_src>

<mosaic_0001>
module attributes {stable_mosaic.version = 11 : i64} {
  func.func @_embed_proj_kernel(%arg0: i32, %arg1: memref<16x768xbf16, #tpu.memory_space<vmem>>, %arg2: memref<16x1xf32, #tpu.memory_space<vmem>>, %arg3: memref<16x1xf32, #tpu.memory_space<vmem>>, %arg4: memref<2x128xf32, #tpu.memory_space<vmem>>, %arg5: memref<1x768xf32, #tpu.memory_space<vmem>>, %arg6: memref<1x768xf32, #tpu.memory_space<vmem>>, %arg7: memref<768x128xbf16, #tpu.memory_space<vmem>>, %arg8: memref<1x128xf32, #tpu.memory_space<vmem>>, %arg9: memref<16x128xbf16, #tpu.memory_space<vmem>>) attributes {dimension_semantics = [#tpu.dimension_semantics<parallel>], iteration_bounds = array<i64: 1>, scalar_prefetch = 0 : i64, scratch_operands = 0 : i64, tpu.core_type = #tpu.core_type<tc>, window_params = [{transform_indices = @transform_0, window_bounds = array<i64: 16, 768>}, {transform_indices = @transform_1, window_bounds = array<i64: 16, 1>}, {transform_indices = @transform_2, window_bounds = array<i64: 16, 1>}, {pipeline_mode = #tpu.pipeline_mode<synchronous>, transform_indices = @transform_3, window_bounds = array<i64: 2, 128>}, {pipeline_mode = #tpu.pipeline_mode<synchronous>, transform_indices = @transform_4, window_bounds = array<i64: 1, 768>}, {pipeline_mode = #tpu.pipeline_mode<synchronous>, transform_indices = @transform_5, window_bounds = array<i64: 1, 768>}, {pipeline_mode = #tpu.pipeline_mode<synchronous>, transform_indices = @transform_6, window_bounds = array<i64: 768, 128>}, {pipeline_mode = #tpu.pipeline_mode<synchronous>, transform_indices = @transform_7, window_bounds = array<i64: 1, 128>}, {transform_indices = @transform_8, window_bounds = array<i64: 16, 128>}]} {
    %c0 = arith.constant 0 : index
    %c0_0 = arith.constant 0 : index
    %0 = vector.load %arg1[%c0, %c0_0] : memref<16x768xbf16, #tpu.memory_space<vmem>>, vector<16x768xbf16>
    %1 = arith.extf %0 : vector<16x768xbf16> to vector<16x768xf32>
    %c0_1 = arith.constant 0 : index
    %c0_2 = arith.constant 0 : index
    %2 = vector.load %arg2[%c0_1, %c0_2] : memref<16x1xf32, #tpu.memory_space<vmem>>, vector<16x1xf32>
    %3 = vector.broadcast %2 : vector<16x1xf32> to vector<16x768xf32>
    %4 = arith.mulf %1, %3 : vector<16x768xf32>
    %c0_3 = arith.constant 0 : index
    %c0_4 = arith.constant 0 : index
    %5 = vector.load %arg5[%c0_3, %c0_4] : memref<1x768xf32, #tpu.memory_space<vmem>>, vector<1x768xf32>
    %c0_5 = arith.constant 0 : index
    %c0_6 = arith.constant 0 : index
    %6 = vector.load %arg6[%c0_5, %c0_6] : memref<1x768xf32, #tpu.memory_space<vmem>>, vector<1x768xf32>
    %cst = arith.constant dense<0.000000e+00> : vector<16xf32>
    %7 = vector.multi_reduction <add>, %4, %cst [1] : vector<16x768xf32> to vector<16xf32>
    %8 = vector.shape_cast %7 : vector<16xf32> to vector<16x1xf32>
    %cst_7 = arith.constant 7.680000e+02 : f32
    %9 = vector.broadcast %cst_7 : f32 to vector<16x1xf32>
    %10 = arith.divf %8, %9 : vector<16x1xf32>
    %11 = vector.broadcast %10 : vector<16x1xf32> to vector<16x768xf32>
    %12 = arith.subf %4, %11 : vector<16x768xf32>
    %13 = arith.mulf %12, %12 : vector<16x768xf32>
    %cst_8 = arith.constant dense<0.000000e+00> : vector<16xf32>
    %14 = vector.multi_reduction <add>, %13, %cst_8 [1] : vector<16x768xf32> to vector<16xf32>
    %15 = vector.shape_cast %14 : vector<16xf32> to vector<16x1xf32>
    %cst_9 = arith.constant 7.680000e+02 : f32
    %16 = vector.broadcast %cst_9 : f32 to vector<16x1xf32>
    %17 = arith.divf %15, %16 : vector<16x1xf32>
    %18 = vector.broadcast %10 : vector<16x1xf32> to vector<16x768xf32>
    %19 = arith.subf %4, %18 : vector<16x768xf32>
    %cst_10 = arith.constant 9.99999974E-6 : f32
    %20 = vector.broadcast %cst_10 : f32 to vector<16x1xf32>
    %21 = arith.addf %17, %20 : vector<16x1xf32>
    %22 = math.rsqrt %21 : vector<16x1xf32>
    %23 = vector.broadcast %22 : vector<16x1xf32> to vector<16x768xf32>
    %24 = arith.mulf %19, %23 : vector<16x768xf32>
    %25 = vector.broadcast %5 : vector<1x768xf32> to vector<16x768xf32>
    %26 = arith.mulf %24, %25 : vector<16x768xf32>
    %27 = vector.broadcast %6 : vector<1x768xf32> to vector<16x768xf32>
    %28 = arith.addf %26, %27 : vector<16x768xf32>
    %c0_11 = arith.constant 0 : index
    %c0_12 = arith.constant 0 : index
    %29 = vector.load %arg3[%c0_11, %c0_12] : memref<16x1xf32, #tpu.memory_space<vmem>>, vector<16x1xf32>
    %c1 = arith.constant 1 : index
    %c0_13 = arith.constant 0 : index
    %30 = vector.load %arg4[%c1, %c0_13] : memref<2x128xf32, #tpu.memory_space<vmem>>, vector<1x128xf32>
    %31 = vector.broadcast %29 : vector<16x1xf32> to vector<16x128xf32>
    %32 = vector.broadcast %30 : vector<1x128xf32> to vector<16x128xf32>
    %33 = arith.mulf %31, %32 : vector<16x128xf32>
    %cst_14 = arith.constant 1.000000e+00 : f32
    %34 = vector.broadcast %cst_14 : f32 to vector<16x1xf32>
    %35 = arith.subf %34, %29 : vector<16x1xf32>
    %c0_15 = arith.constant 0 : index
    %c0_16 = arith.constant 0 : index
    %36 = vector.load %arg4[%c0_15, %c0_16] : memref<2x128xf32, #tpu.memory_space<vmem>>, vector<1x128xf32>
    %37 = vector.broadcast %35 : vector<16x1xf32> to vector<16x128xf32>
    %38 = vector.broadcast %36 : vector<1x128xf32> to vector<16x128xf32>
    %39 = arith.mulf %37, %38 : vector<16x128xf32>
    %40 = arith.addf %33, %39 : vector<16x128xf32>
    %c0_17 = arith.constant 0 : index
    %c0_18 = arith.constant 0 : index
    %41 = vector.load %arg7[%c0_17, %c0_18] : memref<768x128xbf16, #tpu.memory_space<vmem>>, vector<768x128xbf16>
    %42 = arith.truncf %28 : vector<16x768xf32> to vector<16x768xbf16>
    %cst_19 = arith.constant dense<0.000000e+00> : vector<16x128xf32>
    %43 = tpu.matmul %42, %41, %cst_19 {dimension_numbers = #tpu.dot_dimension_numbers<[1], [0], [0], [1], [0, 0, 1, 1], [], []>} : vector<16x768xbf16>, vector<768x128xbf16>, vector<16x128xf32> -> vector<16x128xf32>
    %44 = arith.addf %43, %40 : vector<16x128xf32>
    %c0_20 = arith.constant 0 : index
    %c0_21 = arith.constant 0 : index
    %45 = vector.load %arg8[%c0_20, %c0_21] : memref<1x128xf32, #tpu.memory_space<vmem>>, vector<1x128xf32>
    %46 = vector.broadcast %45 : vector<1x128xf32> to vector<16x128xf32>
    %47 = arith.addf %44, %46 : vector<16x128xf32>
    %48 = arith.truncf %47 : vector<16x128xf32> to vector<16x128xbf16>
    %c0_22 = arith.constant 0 : index
    %c0_23 = arith.constant 0 : index
    %49 = vector.load %arg9[%c0_22, %c0_23] : memref<16x128xbf16, #tpu.memory_space<vmem>>, vector<16x128xbf16>
    tpu.vector_store %arg9[%c0_22, %c0_23], %48 {strides = array<i32>} : memref<16x128xbf16, #tpu.memory_space<vmem>>, vector<16x128xbf16>,
    return
  }
  func.func @transform_0(%arg0: i32) -> (i32, i32) {
    %c0_i32 = arith.constant 0 : i32
    %c0_i32_0 = arith.constant 0 : i32
    return %arg0, %c0_i32 : i32, i32
  }
  func.func @transform_1(%arg0: i32) -> (i32, i32) {
    %c0_i32 = arith.constant 0 : i32
    %c0_i32_0 = arith.constant 0 : i32
    return %arg0, %c0_i32 : i32, i32
  }
  func.func @transform_2(%arg0: i32) -> (i32, i32) {
    %c0_i32 = arith.constant 0 : i32
    %c0_i32_0 = arith.constant 0 : i32
    return %arg0, %c0_i32 : i32, i32
  }
  func.func @transform_3(%arg0: i32) -> (i32, i32) {
    %c0_i32 = arith.constant 0 : i32
    %c0_i32_0 = arith.constant 0 : i32
    %c0_i32_1 = arith.constant 0 : i32
    return %c0_i32, %c0_i32_0 : i32, i32
  }
  func.func @transform_4(%arg0: i32) -> (i32, i32) {
    %c0_i32 = arith.constant 0 : i32
    %c0_i32_0 = arith.constant 0 : i32
    %c0_i32_1 = arith.constant 0 : i32
    return %c0_i32, %c0_i32_0 : i32, i32
  }
  func.func @transform_5(%arg0: i32) -> (i32, i32) {
    %c0_i32 = arith.constant 0 : i32
    %c0_i32_0 = arith.constant 0 : i32
    %c0_i32_1 = arith.constant 0 : i32
    return %c0_i32, %c0_i32_0 : i32, i32
  }
  func.func @transform_6(%arg0: i32) -> (i32, i32) {
    %c0_i32 = arith.constant 0 : i32
    %c0_i32_0 = arith.constant 0 : i32
    %c0_i32_1 = arith.constant 0 : i32
    return %c0_i32, %c0_i32_0 : i32, i32
  }
  func.func @transform_7(%arg0: i32) -> (i32, i32) {
    %c0_i32 = arith.constant 0 : i32
    %c0_i32_0 = arith.constant 0 : i32
    %c0_i32_1 = arith.constant 0 : i32
    return %c0_i32, %c0_i32_0 : i32, i32
  }
  func.func @transform_8(%arg0: i32) -> (i32, i32) {
    %c0_i32 = arith.constant 0 : i32
    %c0_i32_0 = arith.constant 0 : i32
    return %arg0, %c0_i32 : i32, i32
  }
}

</mosaic_0001>

<bundles_post_ra>
// kernel: tpu_custom_call.1
= control target key start
LH: loop header
LB: loop body
LE: loop exit
PB: predicated region body
PF: predicated region fallthrough
CT: control target
= control target key end

     0   :  { %13 = vsyncpa [#allocation3], 0  ;;  %s1334_s0 = inlined_call_operand.hbm [shape: bf16[16,768], index: 0, kind: input, shape index: {}]   ;;  %s1335_s1 = inlined_call_operand.vmem [shape: f32[16,1], index: 1, kind: input, shape index: {}]   ;;  %s1336_s2 = inlined_call_operand.vmem [shape: f32[16,1], index: 2, kind: input, shape index: {}]   ;;  %s1337_s3 = inlined_call_operand.vmem [shape: f32[2,128], index: 3, kind: input, shape index: {}]   ;;  %s1338_s4 = inlined_call_operand.vmem [shape: f32[1,768], index: 4, kind: input, shape index: {}]   ;;  %s1339_s5 = inlined_call_operand.vmem [shape: f32[1,768], index: 5, kind: input, shape index: {}]   ;;  %s1340_s6 = inlined_call_operand.hbm [shape: bf16[768,128], index: 6, kind: input, shape index: {}]   ;;  %s1341_s7 = inlined_call_operand.vmem [shape: f32[1,128], index: 7, kind: input, shape index: {}]   ;;  %s1342_s8 = inlined_call_operand.hbm [shape: bf16[16,128], index: 8, kind: output, shape index: {}]  }
   0x1   :  { %14 = vsyncpa [#allocation6], 0 }
   0x2   :  { %15 = vsyncpa [#allocation4], 0  ;;  %s1112_s27 = smov [#allocation2]   ;;  %s1040_s9 = scalar_lea.hbm %s1334_s0, 768 }
   0x3   :  { %s21_s28 = sshll.u32 %s1112_s27, 4  ;;  %p1041_p0 = scmp.ne.s32.totalorder %s1334_s0, %s1040_s9  ;;  %s22_s28 = int_to_ptr.vmem [resolvable:$true] %s21_s28 }
   0x4   :  { %p1044_p1 = scmp.lt.u32.totalorder %s1040_s9, %s1334_s0 }
   0x6   :  { %p1046_p2 = pnand %p1044_p1, %p1041_p0 }
   0x8   :  { %1049 = shalt.err (!%p1046_p2)
}
   0x9   :  { %s1050_s14 = scalar_lea.vmem %s22_s28, 768  ;;  %p1055_p4 = scmp.lt.s32.totalorder %s22_s28, %s22_s28 }
   0xa   :  { %p1051_p3 = scmp.ne.s32.totalorder %s22_s28, %s1050_s14  ;;  %p1056_p5 = scmp.lt.s32.totalorder %s1050_s14, %s1050_s14 }
   0xc   :  { %p1057_p6 = por %p1056_p5, %p1055_p4 }
   0xe   :  { %p1058_p7 = pnand %p1057_p6, %p1051_p3 }
  0x10   :  { %1061 = shalt.err (!%p1058_p7)
}
  0x11   :  { %s1113_s15 = smov 384   ;;  %s1114_s16 = smov 24  }
  0x12   :  { %27 = dma.hbm_to_vmem [thread:$0]  %s1334_s0, 768, %s22_s28, [#allocation3], %s1113_s15, %s1113_s15, %s1114_s16  }
  0x13   :  { %s1115_s19 = smov [#allocation5]   ;;  %s1062_s23 = scalar_lea.hbm %s1340_s6, 6144 }
  0x14   :  { %s43_s20 = sshll.u32 %s1115_s19, 4  ;;  %p1063_p8 = scmp.ne.s32.totalorder %s1340_s6, %s1062_s23  ;;  %s44_s20 = int_to_ptr.vmem [resolvable:$true] %s43_s20 }
  0x15   :  { %p1066_p9 = scmp.lt.u32.totalorder %s1062_s23, %s1340_s6 }
  0x17   :  { %p1068_p10 = pnand %p1066_p9, %p1063_p8 }
  0x19   :  { %1071 = shalt.err (!%p1068_p10)
}
  0x1a   :  { %s1072_s29 = scalar_lea.vmem %s44_s20, 6144  ;;  %p1077_p12 = scmp.lt.s32.totalorder %s44_s20, %s44_s20 }
  0x1b   :  { %p1073_p11 = scmp.ne.s32.totalorder %s44_s20, %s1072_s29  ;;  %p1078_p13 = scmp.lt.s32.totalorder %s1072_s29, %s1072_s29 }
  0x1d   :  { %p1079_p0 = por %p1078_p13, %p1077_p12 }
  0x1f   :  { %p1080_p1 = pnand %p1079_p0, %p1073_p11 }
  0x21   :  { %1083 = shalt.err (!%p1080_p1)
}
  0x22   :  { %s1116_s0 = smov 64   ;;  %s1117_s28 = smov 4  }
  0x23   :  { %49 = dma.hbm_to_vmem [thread:$0]  %s1340_s6, 6144, %s44_s20, [#allocation6], %s1116_s0, %s1116_s0, %s1117_s28  }
  0x24   :  { %1106 = dma.done.wait [#allocation3], 768  }
  0x25   :  { %1107 = vsyncadd [#allocation3], 4294966528 }
  0x26   :  { %1108 = dma.done.wait [#allocation6], 6144  }
  0x27   :  { %1109 = vsyncadd [#allocation6], 4294961152  ;;  %v1118_v0 = vmov 0   ;;  %v77_v1 = vld [vmem:[%s1335_s1] sm:$0xff]  ;;  %v78_v2 = vld [vmem:[%s1335_s1 + $0x8] sm:$0xff]  ;;  %s1119_s22 = smov [#allocation7]  }
  0x28   :  { %986 = vset.pattern.permute.xlu0 %v1118_v0  ;;  %987 = vset.pattern.permute.xlu1 %v1118_v0  ;;  %v59_v3 = vld [vmem:[#allocation2] sm:$0xff]  ;;  %v60_v4 = vld [vmem:[#allocation2 + $0x8] sm:$0xff]  ;;  %v62_v7 = vld [vmem:[#allocation2 + $0x18] sm:$0xff]  ;;  %s839_s23 = sshll.u32 %s1119_s22, 4  ;;  %s840_s23 = int_to_ptr.vmem [resolvable:$true] %s839_s23 }
  0x29   :  { %81 = vperm.xlu0 %986, %v77_v1   ;;  %v65_v5 = vunpack.c.l.bf16 %v59_v3  ;;  %v66_v6 = vunpack.c.h.bf16 %v59_v3  ;;  %v67_v8 = vunpack.c.l.bf16 %v60_v4  ;;  %v61_v10 = vld [vmem:[#allocation2 + $0x10] sm:$0xff]  ;;  %v68_v11 = vunpack.c.h.bf16 %v60_v4  ;;  %v63_v12 = vld [vmem:[#allocation2 + $0x20] sm:$0xff]  ;;  %v64_v20 = vld [vmem:[#allocation2 + $0x28] sm:$0xff]  ;;  %s1084_s24 = scalar_lea.vmem %s840_s23, 128  ;;  %p1089_p3 = scmp.lt.s32.totalorder %s840_s23, %s840_s23 }
  0x2a   :  { %v71_v15 = vunpack.c.l.bf16 %v62_v7  ;;  %v72_v16 = vunpack.c.h.bf16 %v62_v7  ;;  %v69_v17 = vunpack.c.l.bf16 %v61_v10  ;;  %v73_v21 = vunpack.c.l.bf16 %v63_v12  ;;  %v988_v45 = vld [vmem:[#allocation5 + $0x40] sm:$0xff]   ;;  %v992_v49 = vld [vmem:[#allocation5 + $0x48] sm:$0xff]   ;;  %p1085_p2 = scmp.ne.s32.totalorder %s840_s23, %s1084_s24  ;;  %p1090_p4 = scmp.lt.s32.totalorder %s1084_s24, %s1084_s24 }
  0x2b   :  { %v70_v23 = vunpack.c.h.bf16 %v61_v10  ;;  %v74_v24 = vunpack.c.h.bf16 %v63_v12  ;;  %v75_v29 = vunpack.c.l.bf16 %v64_v20  ;;  %v76_v34 = vunpack.c.h.bf16 %v64_v20  ;;  %v989_v46 = vld [vmem:[#allocation5] sm:$0xff]   ;;  %912 = vmatprep.subr.bf16.mxu0 %v988_v45  ;;  %v1013_v45 = vld [vmem:[#allocation5 + $0x30] sm:$0xff]  }
  0x2c   :  { %v990_v47 = vld [vmem:[#allocation5 + $0xc0] sm:$0xff]   ;;  %913 = vmatpush3.bf16.msra.mxu0 %v989_v46  ;;  %v1015_v46 = vld [vmem:[#allocation5 + $0xb0] sm:$0xff]   ;;  %p1091_p5 = por %p1090_p4, %p1089_p3 }
  0x2d   :  { %86 = vperm.xlu0 %986, %v78_v2   ;;  %v991_v48 = vld [vmem:[#allocation5 + $0x80] sm:$0xff]   ;;  %934 = vmatprep.subr.bf16.mxu1 %v990_v47  ;;  %v1016_v47 = vld [vmem:[#allocation5 + $0x78] sm:$0xff]  }
  0x2e   :  { %935 = vmatpush3.bf16.msra.mxu1 %v991_v48  ;;  %914 = vmatprep.subr.bf16.mxu0 %v992_v49  ;;  %v1018_v48 = vld [vmem:[#allocation5 + $0xf8] sm:$0xff]   ;;  %p1092_p6 = pnand %p1091_p5, %p1085_p2 }
  0x2f   :  { %v1017_v49 = vld [vmem:[#allocation5 + $0x38] sm:$0xff]  }
  0xa8   :  { %v82_v9 = vpop.permute.xlu0 %81 }
  0xa9   :  { %v89_v13 = vmul.f32 %v82_v9, %v65_v5  ;;  %v90_v14 = vmul.f32 %v82_v9, %v66_v6  ;;  %v91_v18 = vmul.f32 %v82_v9, %v67_v8  ;;  %v92_v25 = vmul.f32 %v82_v9, %v68_v11 }
  0xaa   :  { %v93_v30 = vmul.f32 %v82_v9, %v69_v17  ;;  %v94_v35 = vmul.f32 %v82_v9, %v70_v23 }
  0xab   :  { %v103_v19 = vadd.f32 %v90_v14, %v89_v13 }
  0xac   :  { %v87_v22 = vpop.permute.xlu0 %86 }
  0xad   :  { %v104_v26 = vadd.f32 %v103_v19, %v91_v18  ;;  %v95_v27 = vmul.f32 %v87_v22, %v71_v15  ;;  %v96_v28 = vmul.f32 %v87_v22, %v72_v16  ;;  %v97_v32 = vmul.f32 %v87_v22, %v73_v21 }
  0xae   :  { %v98_v37 = vmul.f32 %v87_v22, %v74_v24  ;;  %v99_v40 = vmul.f32 %v87_v22, %v75_v29  ;;  %v100_v42 = vmul.f32 %v87_v22, %v76_v34  ;;  %v993_v24 = vld [vmem:[#allocation5 + $0x8] sm:$0xff]   ;;  %v998_v29 = vld [vmem:[#allocation5 + $0xd0] sm:$0xff]   ;;  %v1003_v34 = vld [vmem:[#allocation5 + $0x98] sm:$0xff]  }
  0xaf   :  { %v105_v31 = vadd.f32 %v104_v26, %v92_v25  ;;  %v110_v33 = vadd.f32 %v96_v28, %v95_v27  ;;  %v995_v26 = vld [vmem:[#allocation5 + $0x88] sm:$0xff]   ;;  %915 = vmatpush3.bf16.msra.mxu0 %v993_v24 }
  0xb1   :  { %v106_v36 = vadd.f32 %v105_v31, %v93_v30  ;;  %v111_v38 = vadd.f32 %v110_v33, %v97_v32  ;;  %v1000_v31 = vld [vmem:[#allocation5 + $0x58] sm:$0xff]  }
  0xb2   :  { %v1002_v33 = vld [vmem:[#allocation5 + $0xd8] sm:$0xff]  }
  0xb3   :  { %v107_v39 = vadd.f32 %v106_v36, %v94_v35  ;;  %v112_v41 = vadd.f32 %v111_v38, %v98_v37  ;;  %v1005_v36 = vld [vmem:[#allocation5 + $0x20] sm:$0xff]  }
  0xb4   :  { %v1007_v38 = vld [vmem:[#allocation5 + $0xa0] sm:$0xff]  }
  0xb5   :  { %108 = vadd.xlane.f32.xlu1 %v107_v39  ;;  %v113_v43 = vadd.f32 %v112_v41, %v99_v40  ;;  %v1008_v39 = vld [vmem:[#allocation5 + $0x68] sm:$0xff]  }
  0xb6   :  { %v1009_v41 = vld [vmem:[#allocation5 + $0x28] sm:$0xff]  }
  0xb7   :  { %v114_v44 = vadd.f32 %v113_v43, %v100_v42  ;;  %v1012_v43 = vld [vmem:[#allocation5 + $0x70] sm:$0xff]  }
  0xb9   :  { %115 = vadd.xlane.f32.xlu1 %v114_v44  ;;  %v1014_v44 = vld [vmem:[#allocation5 + $0xf0] sm:$0xff]  }
 0x142   :  { %v109_v50 = vpop.xlane.xlu1 %108 }
 0x143   :  { %v118_v51 = vmul.f32 0.0013020834, %v109_v50  ;;  %v1019_v50 = vld [vmem:[#allocation5 + $0xb8] sm:$0xff]  }
 0x145   :  { %v1198_v52 = vsub.f32 %v89_v13, %v118_v51  ;;  %v1200_v53 = vsub.f32 %v90_v14, %v118_v51  ;;  %v1202_v54 = vsub.f32 %v91_v18, %v118_v51  ;;  %v1204_v56 = vsub.f32 %v92_v25, %v118_v51  ;;  %v994_v25 = vld [vmem:[#allocation5 + $0xc8] sm:$0xff]  }
 0x146   :  { %v116_v55 = vpop.xlane.xlu1 %115  ;;  %v1210_v60 = vsub.f32 %v93_v30, %v118_v51  ;;  %v1220_v2 = vsub.f32 %v94_v35, %v118_v51  ;;  %936 = vmatprep.subr.bf16.mxu1 %v994_v25  ;;  %v999_v30 = vld [vmem:[#allocation5 + $0x90] sm:$0xff]   ;;  %v1004_v35 = vld [vmem:[#allocation5 + $0x60] sm:$0xff]  }
 0x147   :  { %v119_v57 = vmul.f32 0.0013020834, %v116_v55  ;;  %v132_v58 = vmul.f32 %v1198_v52, %v1198_v52  ;;  %v133_v59 = vmul.f32 %v1200_v53, %v1200_v53  ;;  %v134_v61 = vmul.f32 %v1202_v54, %v1202_v54  ;;  %937 = vmatpush3.bf16.msra.mxu1 %v995_v26  ;;  %v1020_v51 = vld [vmem:[#allocation5 + $0x140] sm:$0xff]   ;;  %v262_v55 = vld [vmem:[%s1336_s2] sm:$0xff] }
 0x148   :  { %v135_v3 = vmul.f32 %v1204_v56, %v1204_v56  ;;  %v136_v8 = vmul.f32 %v1210_v60, %v1210_v60  ;;  %v137_v13 = vmul.f32 %v1220_v2, %v1220_v2  ;;  %938 = vmatprep.subr.bf16.mxu1 %v998_v29 }
 0x149   :  { %v144_v62 = vadd.f32 %v133_v59, %v132_v58  ;;  %v1214_v63 = vsub.f32 %v95_v27, %v119_v57  ;;  %v1216_v0 = vsub.f32 %v96_v28, %v119_v57  ;;  %v1218_v1 = vsub.f32 %v97_v32, %v119_v57  ;;  %v996_v27 = vld [vmem:[#allocation5 + $0x50] sm:$0xff]   ;;  %v1001_v32 = vld [vmem:[#allocation5 + $0x18] sm:$0xff]  }
 0x14a   :  { %v1224_v5 = vsub.f32 %v98_v37, %v119_v57  ;;  %v1232_v10 = vsub.f32 %v99_v40, %v119_v57  ;;  %v1238_v15 = vsub.f32 %v100_v42, %v119_v57  ;;  %v997_v28 = vld [vmem:[#allocation5 + $0x10] sm:$0xff]   ;;  %916 = vmatprep.subr.bf16.mxu0 %v996_v27  ;;  %v1006_v37 = vld [vmem:[#allocation5 + $0xe0] sm:$0xff]   ;;  %v1010_v40 = vld [vmem:[#allocation5 + $0xe8] sm:$0xff]   ;;  %v281_v58 = vsub.f32 1.0, %v262_v55 }
 0x14b   :  { %v145_v4 = vadd.f32 %v144_v62, %v134_v61  ;;  %v138_v6 = vmul.f32 %v1214_v63, %v1214_v63  ;;  %v139_v7 = vmul.f32 %v1216_v0, %v1216_v0  ;;  %v140_v11 = vmul.f32 %v1218_v1, %v1218_v1  ;;  %917 = vmatpush3.bf16.msra.mxu0 %v997_v28  ;;  %v1011_v42 = vld [vmem:[#allocation5 + $0xa8] sm:$0xff]   ;;  %v263_v57 = vld [vmem:[%s1336_s2 + $0x8] sm:$0xff] }
 0x14c   :  { %v141_v16 = vmul.f32 %v1224_v5, %v1224_v5  ;;  %v142_v19 = vmul.f32 %v1232_v10, %v1232_v10  ;;  %v143_v21 = vmul.f32 %v1238_v15, %v1238_v15  ;;  %939 = vmatpush3.bf16.msra.mxu1 %v999_v30  ;;  %918 = vmatprep.subr.bf16.mxu0 %v1000_v31  ;;  %v282_v59 = vsub.f32 1.0, %v263_v57 }
 0x14d   :  { %v146_v9 = vadd.f32 %v145_v4, %v135_v3  ;;  %v151_v12 = vadd.f32 %v139_v7, %v138_v6  ;;  %940 = vmatprep.subr.bf16.mxu1 %v1002_v33  ;;  %v177_v4 = vlaneseq }
 0x14f   :  { %v147_v14 = vadd.f32 %v146_v9, %v136_v8  ;;  %v152_v17 = vadd.f32 %v151_v12, %v140_v11  ;;  %919 = vmatpush3.bf16.msra.mxu0 %v1001_v32  ;;  %v1252_v9 = vshrl.u32 %v177_v4, 7  ;;  %v1258_v12 = vld [vmem:[%s1338_s4] sm:$0x3f] }
 0x150   :  { %941 = vmatpush3.bf16.msra.mxu1 %v1003_v34  ;;  %920 = vmatprep.subr.bf16.mxu0 %v1004_v35  ;;  %v1024_v4 = vld [vmem:[#allocation5 + $0x150] sm:$0xff]  }
 0x151   :  { %v148_v18 = vadd.f32 %v147_v14, %v137_v13  ;;  %v153_v20 = vadd.f32 %v152_v17, %v141_v16  ;;  %942 = vmatprep.subr.bf16.mxu1 %v1006_v37  ;;  %v183_v11 = vsub.s32 1, %v1252_v9  ;;  %v191_v13 = vsub.s32 3, %v1252_v9 }
 0x152   :  { %v179_v14 = vsub.s32 0, %v1252_v9  ;;  %v187_v16 = vsub.s32 2, %v1252_v9  ;;  %v199_v17 = vsub.s32 5, %v1252_v9 }
 0x153   :  { %149 = vadd.xlane.f32.xlu0 %v148_v18  ;;  %v154_v22 = vadd.f32 %v153_v20, %v142_v19  ;;  %921 = vmatpush3.bf16.msra.mxu0 %v1005_v36  ;;  %v1269_v19 = vld [vmem:[%s1339_s5] sm:$0x3f]  ;;  %v184_v20 = vrot.slane %v1258_v12, %v183_v11 }
 0x154   :  { %943 = vmatpush3.bf16.msra.mxu1 %v1007_v38  ;;  %922 = vmatprep.subr.bf16.mxu0 %v1008_v39  ;;  %v180_v25 = vrot.slane %v1258_v12, %v179_v14  ;;  %v188_v27 = vrot.slane %v1258_v12, %v187_v16  ;;  %v227_v28 = vrot.slane %v1269_v19, %v183_v11  ;;  %v1028_v11 = vld [vmem:[#allocation5 + $0x160] sm:$0xff]  }
 0x155   :  { %v155_v23 = vadd.f32 %v154_v22, %v143_v21  ;;  %944 = vmatprep.subr.bf16.mxu1 %v1010_v40  ;;  %v200_v29 = vrot.slane %v1258_v12, %v199_v17  ;;  %v235_v31 = vrot.slane %v1269_v19, %v191_v13  ;;  %v231_v32 = vrot.slane %v1269_v19, %v187_v16 }
 0x156   :  { %v195_v16 = vsub.s32 4, %v1252_v9 }
 0x157   :  { %156 = vadd.xlane.f32.xlu1 %v155_v23  ;;  %923 = vmatpush3.bf16.msra.mxu0 %v1009_v41  ;;  %v192_v23 = vrot.slane %v1258_v12, %v191_v13  ;;  %v1029_v13 = vld [vmem:[#allocation5 + $0x120] sm:$0xff]  }
 0x158   :  { %945 = vmatpush3.bf16.msra.mxu1 %v1011_v42  ;;  %924 = vmatprep.subr.bf16.mxu0 %v1012_v43  ;;  %v239_v9 = vrot.slane %v1269_v19, %v195_v16 }
 0x159   :  { %946 = vmatprep.subr.bf16.mxu1 %v1014_v44 }
 0x15b   :  { %925 = vmatpush3.bf16.msra.mxu0 %v1013_v45 }
 0x15c   :  { %947 = vmatpush3.bf16.msra.mxu1 %v1015_v46  ;;  %926 = vmatprep.subr.bf16.mxu0 %v1016_v47 }
 0x15d   :  { %948 = vmatprep.subr.bf16.mxu1 %v1018_v48 }
 0x15f   :  { %927 = vmatpush3.bf16.msra.mxu0 %v1017_v49 }
 0x160   :  { %949 = vmatpush3.bf16.msra.mxu1 %v1019_v50  ;;  %956 = vmatprep.subr.bf16.mxu0 %v1020_v51 }
 0x168   :  { %267 = vperm.xlu1 %987, %v262_v55   ;;  %v1021_v55 = vld [vmem:[#allocation5 + $0x100] sm:$0xff]  }
 0x16c   :  { %272 = vperm.xlu1 %987, %v263_v57  }
 0x170   :  { %286 = vperm.xlu1 %987, %v281_v58  }
 0x174   :  { %291 = vperm.xlu1 %987, %v282_v59  }
 0x1e0   :  { %v150_v61 = vpop.xlane.xlu0 %149 }
 0x1e1   :  { %v158_v62 = vmul.f32 0.0013020834, %v150_v61 }
 0x1e3   :  { %v160_v3 = vadd.f32 1e-05, %v158_v62 }
 0x1e4   :  { %v157_v6 = vpop.xlane.xlu1 %156 }
 0x1e5   :  { %1036 = vrsqrt.f32 %v160_v3  ;;  %v159_v7 = vmul.f32 0.0013020834, %v157_v6  ;;  %v1023_v3 = vld [vmem:[#allocation5 + $0x108] sm:$0xff]   ;;  %v1025_v6 = vld [vmem:[#allocation5 + $0x110] sm:$0xff]  }
 0x1e7   :  { %v161_v8 = vadd.f32 1e-05, %v159_v7  ;;  %v1026_v7 = vld [vmem:[#allocation5 + $0x158] sm:$0xff]  }
 0x1e9   :  { %1038 = vrsqrt.f32 %v161_v8  ;;  %v1027_v8 = vld [vmem:[#allocation5 + $0x118] sm:$0xff]  }
 0x1ef   :  { %v1264_v18 = vpop.eup %1036 }
 0x1f0   :  { %v165_v21 = vmul.f32 %v1264_v18, %v1200_v53  ;;  %v167_v22 = vmul.f32 %v1264_v18, %v1204_v56  ;;  %v164_v24 = vmul.f32 %v1264_v18, %v1198_v52  ;;  %v166_v26 = vmul.f32 %v1264_v18, %v1202_v54 }
 0x1f1   :  { %v169_v53 = vmul.f32 %v1264_v18, %v1220_v2  ;;  %v223_v52 = vrot.slane %v1269_v19, %v179_v14  ;;  %v243_v2 = vrot.slane %v1269_v19, %v199_v17  ;;  %v1030_v14 = vld [vmem:[#allocation5 + $0x168] sm:$0xff]  }
 0x1f2   :  { %v208_v30 = vmul.f32 %v184_v20, %v165_v21  ;;  %v210_v34 = vmul.f32 %v192_v23, %v167_v22  ;;  %v207_v36 = vmul.f32 %v180_v25, %v164_v24  ;;  %v209_v38 = vmul.f32 %v188_v27, %v166_v26  ;;  %v1031_v17 = vld [vmem:[#allocation5 + $0x128] sm:$0xff]   ;;  %v1033_v24 = vld [vmem:[#allocation5 + $0x130] sm:$0xff]  }
 0x1f3   :  { %v1287_v56 = vpop.eup %1038  ;;  %v168_v22 = vmul.f32 %v1264_v18, %v1210_v60 }
 0x1f4   :  { %v171_v54 = vmul.f32 %v1287_v56, %v1216_v0  ;;  %v173_v33 = vmul.f32 %v1287_v56, %v1224_v5  ;;  %v170_v35 = vmul.f32 %v1287_v56, %v1214_v63  ;;  %v172_v37 = vmul.f32 %v1287_v56, %v1218_v1 }
 0x1f5   :  { %v175_v41 = vmul.f32 %v1287_v56, %v1238_v15  ;;  %v212_v0 = vmul.f32 %v200_v29, %v169_v53  ;;  %v251_v42 = vadd.f32 %v227_v28, %v208_v30  ;;  %v253_v45 = vadd.f32 %v235_v31, %v210_v34  ;;  %v1022_v15 = vld [vmem:[#allocation5 + $0x148] sm:$0xff]   ;;  %v853_v30 = vld [vmem:[%s1337_s3] ss:$0 sm:$0xff] }
 0x1f6   :  { %v214_v39 = vmul.f32 %v184_v20, %v171_v54  ;;  %v216_v40 = vmul.f32 %v192_v23, %v173_v33  ;;  %v213_v43 = vmul.f32 %v180_v25, %v170_v35  ;;  %v215_v5 = vmul.f32 %v188_v27, %v172_v37  ;;  %v1032_v20 = vld [vmem:[#allocation5 + $0x170] sm:$0xff]   ;;  %v1034_v25 = vld [vmem:[#allocation5 + $0x178] sm:$0xff]  }
 0x1f7   :  { %v218_v47 = vmul.f32 %v200_v29, %v175_v41  ;;  %v250_v48 = vadd.f32 %v223_v52, %v207_v36  ;;  %v252_v49 = vadd.f32 %v231_v32, %v209_v38  ;;  %v255_v57 = vadd.f32 %v243_v2, %v212_v0 }
 0x1f8   :  { %v257_v44 = vadd.f32 %v227_v28, %v214_v39  ;;  %v259_v46 = vadd.f32 %v235_v31, %v216_v40  ;;  %v256_v63 = vadd.f32 %v223_v52, %v213_v43  ;;  %v258_v50 = vadd.f32 %v231_v32, %v215_v5  ;;  %v1035_v28 = vld [vmem:[#allocation5 + $0x138] sm:$0xff]  }
 0x1f9   :  { %v261_v58 = vadd.f32 %v243_v2, %v218_v47  ;;  %v174_v21 = vmul.f32 %v1287_v56, %v1232_v10  ;;  %v196_v23 = vrot.slane %v1258_v12, %v195_v16  ;;  %v268_v56 = vpop.permute.xlu1 %267  ;;  %v852_v12 = vld [vmem:[%s1337_s3 + $0x1] ss:$0 sm:$0xff] }
 0x1fa   :  { %v399_v51 = vpack.c.bf16 %v257_v44, %v251_v42  ;;  %v401_v1 = vpack.c.bf16 %v259_v46, %v253_v45  ;;  %v398_v59 = vpack.c.bf16 %v256_v63, %v250_v48  ;;  %v400_v61 = vpack.c.bf16 %v258_v50, %v252_v49 }
 0x1fb   :  { %v403_v62 = vpack.c.bf16 %v261_v58, %v255_v57  ;;  %v217_v26 = vmul.f32 %v196_v23, %v174_v21  ;;  %v211_v27 = vmul.f32 %v196_v23, %v168_v22  ;;  %v279_v31 = vmul.f32 %v852_v12, %v268_v56  ;;  %v902_v57 = vld [vmem:[%s1341_s7] ss:$0 sm:$0xff] }
 0x1fc   :  { %724 = vmatprep.mubr.bf16.mxu0 %v399_v51  ;;  %765 = vmatprep.mubr.bf16.mxu1 %v401_v1 }
 0x1fd   :  { %725 = vmatmul.mubr.bf16.vlgmr.msra.gmra.mrb[0].mxu0 %v398_v59  ;;  %766 = vmatmul.mubr.bf16.vlgmr.msra.gmra.mrb[0].mxu1 %v400_v61  ;;  %v260_v53 = vadd.f32 %v239_v9, %v217_v26  ;;  %v254_v29 = vadd.f32 %v239_v9, %v211_v27  ;;  %v273_v60 = vpop.permute.xlu1 %272 }
 0x1fe   :  { %957 = vmatpush3.bf16.msra.mxu0 %v1021_v55  ;;  %806 = vmatprep.mubr.bf16.mxu0 %v403_v62  ;;  %v280_v32 = vmul.f32 %v852_v12, %v273_v60 }
 0x1ff   :  { %958 = vmatprep.subr.bf16.mxu0 %v1022_v15  ;;  %v402_v10 = vpack.c.bf16 %v260_v53, %v254_v29 }
 0x201   :  { %v287_v18 = vpop.permute.xlu1 %286 }
 0x202   :  { %959 = vmatpush3.bf16.msra.mxu0 %v1023_v3  ;;  %v298_v52 = vmul.f32 %v853_v30, %v287_v18 }
 0x203   :  { %960 = vmatprep.subr.bf16.mxu0 %v1024_v4 }
 0x204   :  { %v300_v33 = vadd.f32 %v298_v52, %v279_v31 }
 0x205   :  { %v292_v19 = vpop.permute.xlu1 %291 }
 0x206   :  { %961 = vmatpush3.bf16.msra.mxu0 %v1025_v6  ;;  %v299_v54 = vmul.f32 %v853_v30, %v292_v19 }
 0x207   :  { %962 = vmatprep.subr.bf16.mxu0 %v1026_v7 }
 0x208   :  { %v301_v39 = vadd.f32 %v299_v54, %v280_v32 }
 0x20a   :  { %963 = vmatpush3.bf16.msra.mxu0 %v1027_v8 }
 0x20b   :  { %964 = vmatprep.subr.bf16.mxu0 %v1028_v11 }
 0x20e   :  { %965 = vmatpush3.bf16.msra.mxu0 %v1029_v13 }
 0x20f   :  { %966 = vmatprep.subr.bf16.mxu0 %v1030_v14 }
 0x212   :  { %967 = vmatpush3.bf16.msra.mxu0 %v1031_v17 }
 0x213   :  { %968 = vmatprep.subr.bf16.mxu0 %v1032_v20 }
 0x216   :  { %969 = vmatpush3.bf16.msra.mxu0 %v1033_v24 }
 0x217   :  { %970 = vmatprep.subr.bf16.mxu0 %v1034_v25 }
 0x21a   :  { %971 = vmatpush3.bf16.msra.mxu0 %v1035_v28 }
 0x21d   :  { %807 = vmatmul.mubr.bf16.vlgmr.msra.gmra.mrb[4].mxu0 %v402_v10 }
 0x2d0   :  { %v928_v34 = vpop.f32.mrb[0].mxu0  ;;  %v950_v2 = vpop.f32.mrb[0].mxu1 }
 0x2d1   :  { %v929_v35 = vpop.f32.mrb[1].mxu0  ;;  %v951_v36 = vpop.f32.mrb[1].mxu1 }
 0x2d2   :  { %v930_v37 = vadd.f32 %v929_v35, %v928_v34  ;;  %v952_v38 = vadd.f32 %v951_v36, %v950_v2  ;;  %v931_v40 = vpop.f32.mrb[2].mxu0  ;;  %v953_v41 = vpop.f32.mrb[2].mxu1 }
 0x2d3   :  { %v932_v0 = vpop.f32.mrb[3].mxu0  ;;  %v954_v42 = vpop.f32.mrb[3].mxu1 }
 0x2d4   :  { %v727_v43 = vadd.f32 %v930_v37, %v300_v33  ;;  %v933_v5 = vadd.f32 %v932_v0, %v931_v40  ;;  %v955_v44 = vadd.f32 %v954_v42, %v953_v41 }
 0x2d6   :  { %v768_v45 = vadd.f32 %v952_v38, %v727_v43  ;;  %v730_v46 = vadd.f32 %v933_v5, %v301_v39 }
 0x2d8   :  { %v771_v47 = vadd.f32 %v955_v44, %v730_v46 }
 0x2f0   :  { %v972_v48 = vpop.f32.mrb[4].mxu0 }
 0x2f1   :  { %v973_v63 = vpop.f32.mrb[5].mxu0 }
 0x2f2   :  { %v974_v49 = vadd.f32 %v973_v63, %v972_v48  ;;  %v975_v50 = vpop.f32.mrb[6].mxu0 }
 0x2f3   :  { %v976_v51 = vpop.f32.mrb[7].mxu0 }
 0x2f4   :  { %v809_v1 = vadd.f32 %v974_v49, %v768_v45  ;;  %v977_v55 = vadd.f32 %v976_v51, %v975_v50 }
 0x2f6   :  { %v812_v58 = vadd.f32 %v977_v55, %v771_v47  ;;  %v822_v59 = vadd.f32 %v902_v57, %v809_v1 }
 0x2f8   :  { %v823_v61 = vadd.f32 %v902_v57, %v812_v58 }
 0x2fa   :  { %v910_v15 = vpack.c.bf16 %v823_v61, %v822_v59 }
 0x2fc   :  { %911 = vst [vmem:[#allocation7] sm:$0xff] %v910_v15  }
 0x2fd   :  { %1095 = shalt.err (!%p1092_p6)
}
 0x2fe   :  { %s1096_s27 = scalar_lea.hbm %s1342_s8, 128 }
 0x2ff   :  { %p1097_p7 = scmp.ne.s32.totalorder %s1342_s8, %s1096_s27  ;;  %p1100_p8 = scmp.lt.u32.totalorder %s1096_s27, %s1342_s8 }
 0x301   :  { %p1102_p9 = pnand %p1100_p8, %p1097_p7 }
 0x303   :  { %1105 = shalt.err (!%p1102_p9)
}
 0x304   :  { %845 = dma.vmem_to_hbm [thread:$0]  %s840_s23, 128, %s1342_s8, [#allocation4], %s1116_s0, %s1116_s0, %s1117_s28  }
 0x305   :  { %1110 = dma.done.wait [#allocation4], 128  }
 0x306   :  { %1111 = vsyncadd [#allocation4], 4294967168 }
 0x307   :  { %849 = vsyncpa [#allocation3], 1 }
 0x308   :  { %850 = vsyncpa [#allocation6], 1 }
 0x309   :  { %851 = vsyncpa [#allocation4], 1 }

</bundles_post_ra>
